<compile_context>
chip_gen: v6e
topology: v6e:2x2x1
jax: 0.10.0
libtpu: 0.0.40
codegen_flags: <defaults>
</compile_context>

<pallas_src>
import functools

import jax
import jax.numpy as jnp
from jax.experimental import pallas as pl
from jax.experimental.pallas import tpu as pltpu


def _round_up(x, m):
    return (x + m - 1) // m * m


def _actor_kernel(obs_ref, act_ref, w1_ref, w2_ref, w3_ref, bias_ref, out_ref,
                  *, high, act_dim):
    """One batch tile.

    obs_ref : (TB, obs_dim)           f32
    act_ref : (TB, OUT_W)             f32, zero-padded past act_dim
    w1_ref  : (obs_dim, H1)           param dtype (f32 or bf16)
    w2_ref  : (H1, H2)                param dtype
    w3_ref  : (H2, OUT_W)             param dtype, zero-padded past act_dim
    bias_ref: (4, HPAD)               f32 rows: b1 | b2 | b3(padded) | log_std(padded)
    out_ref : (TB, OUT_W)             f32 packed: [mu (act_dim) | logp (1) | zeros]
    """
    f32 = jnp.float32
    wdt = w1_ref.dtype
    h1 = w1_ref.shape[1]
    h2 = w2_ref.shape[1]
    out_w = w3_ref.shape[1]

    b1 = bias_ref[0:1, :h1]                 # (1, H1)
    b2 = bias_ref[1:2, :h2]                 # (1, H2)
    b3 = bias_ref[2:3, :out_w]              # (1, OUT_W)  (zeros past act_dim)
    log_std = bias_ref[3:4, :out_w]         # (1, OUT_W)  (zeros past act_dim)

    x = obs_ref[...]                                                    # (TB, obs_dim) f32

    a1 = jnp.dot(x.astype(wdt), w1_ref[...], preferred_element_type=f32) + b1
    a1 = jnp.maximum(a1, 0.0)                                           # ReLU (f32)

    a2 = jnp.dot(a1.astype(wdt), w2_ref[...], preferred_element_type=f32) + b2
    a2 = jnp.maximum(a2, 0.0)                                           # ReLU (f32)

    pre = jnp.dot(a2.astype(wdt), w3_ref[...], preferred_element_type=f32) + b3
    mu = high * jnp.tanh(pre)               # (TB, OUT_W); pad columns -> high*tanh(0) = 0

    # Normal(mu, std).log_prob(act) summed over the action dimension.
    a = act_ref[...]                                                    # (TB, OUT_W)
    inv_two_var = 0.5 * jnp.exp(-2.0 * log_std)                         # (1, OUT_W), EUP
    half_log_2pi = jnp.float32(0.9189385332046727)                      # 0.5*log(2*pi)
    per_dim = -((a - mu) ** 2) * inv_two_var - log_std - half_log_2pi   # (TB, OUT_W)

    tb = mu.shape[0]
    col = jax.lax.broadcasted_iota(jnp.int32, (tb, out_w), 1)
    valid = col < act_dim
    logp = jnp.sum(jnp.where(valid, per_dim, 0.0), axis=-1, keepdims=True)   # (TB, 1)

    # Lane-dense packed output: columns [0:act_dim] = mu, column act_dim = logp, rest 0.
    out_ref[...] = jnp.where(col == act_dim, logp, jnp.where(valid, mu, 0.0))


def gaussian_actor_forward(obs, act, params, high, *, block_batch=512):
    """Returns (mu, std, logp) — the Normal(mu, std) parameters plus the summed
    log-prob of `act` (mirrors GaussianActor.forward(obs, act))."""
    obs = jnp.asarray(obs, jnp.float32)
    act = jnp.asarray(act, jnp.float32)
    B, obs_dim = obs.shape

    w1, w2, w3 = params["w1"], params["w2"], params["w3"]
    h1, h2 = w1.shape[1], w2.shape[1]
    act_dim = w3.shape[1]

    # Lane-dense packed output width: [mu | logp | pad] rounded up to 128 lanes.
    out_w = _round_up(act_dim + 1, 128)

    # Pad the last-layer weight and the actions to OUT_W lanes (zero columns are inert).
    w3p = jnp.pad(w3, ((0, 0), (0, out_w - act_dim)))
    actp = jnp.pad(act, ((0, 0), (0, out_w - act_dim)))

    # Pack b1 / b2 / b3 / log_std into one small (4, HPAD) f32 array (one descriptor).
    hpad = _round_up(max(h1, h2, out_w), 128)

    def _row(v):
        v = jnp.asarray(v, jnp.float32).reshape(1, -1)
        return jnp.pad(v, ((0, 0), (0, hpad - v.shape[1])))

    bias_pack = jnp.concatenate(
        [_row(params["b1"]), _row(params["b2"]), _row(params["b3"]),
         _row(params["log_std"])], axis=0)                               # (4, HPAD)

    # Batch tiling (TB multiple of 8, capped at block_batch; fits v7x's smaller VMEM).
    tb = min(block_batch, _round_up(B, 8))
    bp = _round_up(B, tb)
    if bp != B:
        obs = jnp.pad(obs, ((0, bp - B), (0, 0)))
        actp = jnp.pad(actp, ((0, bp - B), (0, 0)))

    kernel = functools.partial(_actor_kernel, high=float(high), act_dim=act_dim)

    packed = pl.pallas_call(
        kernel,
        out_shape=jax.ShapeDtypeStruct((bp, out_w), jnp.float32),
        grid=(bp // tb,),
        in_specs=[
            pl.BlockSpec((tb, obs_dim), lambda i: (i, 0)),      # obs, tiled over batch
            pl.BlockSpec((tb, out_w), lambda i: (i, 0)),        # act (padded), tiled
            pl.BlockSpec((obs_dim, h1), lambda i: (0, 0)),      # W1, VMEM-resident
            pl.BlockSpec((h1, h2), lambda i: (0, 0)),           # W2, VMEM-resident
            pl.BlockSpec((h2, out_w), lambda i: (0, 0)),        # W3 (padded), resident
            pl.BlockSpec((4, hpad), lambda i: (0, 0)),          # packed biases/log_std
        ],
        out_specs=pl.BlockSpec((tb, out_w), lambda i: (i, 0)),
        compiler_params=pltpu.CompilerParams(
            dimension_semantics=("parallel",),                  # v7x: shard batch over 2 TCs
        ),
    )(obs, actp, w1, w2, w3p, bias_pack)

    mu = packed[:B, :act_dim]
    logp = packed[:B, act_dim]
    std = jnp.exp(jnp.asarray(params["log_std"], jnp.float32).reshape(-1))
    # TODO(synk): torch.distributions.Normal object itself has no Pallas equivalent;
    # we return (mu, std, logp) which fully parameterize it.
    return mu, std, logp


def init_params(key, obs_dim, act_dim, hidden_sizes=(64, 64),
                param_dtype=jnp.bfloat16):
    """Deterministic synthetic parameter init (shapes match the nn.Linear layers).

    Weights stored in `param_dtype` (bf16 by default for the v6e/v7x MXU);
    biases and log_std stay float32."""
    k1, k2, k3 = jax.random.split(key, 3)
    h1, h2 = hidden_sizes

    def lin(k, fan_in, fan_out):
        kw, kb = jax.random.split(k)
        w = (jax.random.normal(kw, (fan_in, fan_out), jnp.float32)
             / jnp.sqrt(fan_in)).astype(param_dtype)
        b = 0.1 * jax.random.normal(kb, (fan_out,), jnp.float32)
        return w, b

    w1, b1 = lin(k1, obs_dim, h1)
    w2, b2 = lin(k2, h1, h2)
    w3, b3 = lin(k3, h2, act_dim)
    log_std = jnp.full((act_dim,), -0.5, jnp.float32)    # matches -0.5 * ones(act_dim)
    return dict(w1=w1, b1=b1, w2=w2, b2=b2, w3=w3, b3=b3, log_std=log_std)


def _reference(obs, act, params, high):
    """Pure-JAX reference mirroring the kernel's cast points (weights may be bf16)."""
    f32 = jnp.float32
    wdt = params["w1"].dtype

    def lin(x, w, b):
        return (jnp.dot(x.astype(wdt), w, preferred_element_type=f32)
                + jnp.asarray(b, f32).reshape(1, -1))

    h1 = jnp.maximum(lin(obs, params["w1"], params["b1"]), 0.0)
    h2 = jnp.maximum(lin(h1, params["w2"], params["b2"]), 0.0)
    mu = high * jnp.tanh(lin(h2, params["w3"], params["b3"]))
    log_std = jnp.asarray(params["log_std"], f32).reshape(1, -1)
    std = jnp.exp(log_std)
    per_dim = (-((act - mu) ** 2) / (2.0 * std * std)
               - log_std - 0.5 * jnp.log(2.0 * jnp.pi))
    return mu, std[0], jnp.sum(per_dim, axis=-1)


if __name__ == "__main__":
    OBS_DIM, ACT_DIM, HIGH = 16, 8, 2.0   # HIGH = act_space.high[0]

    key = jax.random.PRNGKey(0)
    kp, ko, ka, ko2, ka2 = jax.random.split(key, 5)

    # --- exact check: float32 params, tiny batch (single tile) ---
    params_f32 = init_params(kp, OBS_DIM, ACT_DIM, param_dtype=jnp.float32)
    obs = jax.random.normal(ko, (8, OBS_DIM), jnp.float32)
    act = jax.random.normal(ka, (8, ACT_DIM), jnp.float32)

    mu, std, logp = gaussian_actor_forward(obs, act, params_f32, HIGH)
    jax.block_until_ready((mu, std, logp))

    mu_r, std_r, logp_r = _reference(obs, act, params_f32, HIGH)
    assert mu.shape == (8, ACT_DIM) and std.shape == (ACT_DIM,) and logp.shape == (8,)
    assert jnp.allclose(mu, mu_r, atol=1e-5), "mu mismatch (f32)"
    assert jnp.allclose(std, std_r, atol=1e-6), "std mismatch (f32)"
    assert jnp.allclose(logp, logp_r, atol=1e-3), "logp mismatch (f32)"

    # --- gridded check: bf16 weights, larger batch exercising tiling + padding ---
    params_bf16 = init_params(kp, OBS_DIM, ACT_DIM, param_dtype=jnp.bfloat16)
    obs2 = jax.random.normal(ko2, (1037, OBS_DIM), jnp.float32)
    act2 = jax.random.normal(ka2, (1037, ACT_DIM), jnp.float32)

    mu2, std2, logp2 = gaussian_actor_forward(obs2, act2, params_bf16, HIGH,
                                              block_batch=512)
    jax.block_until_ready((mu2, std2, logp2))

    mu2_r, std2_r, logp2_r = _reference(obs2, act2, params_bf16, HIGH)
    assert jnp.allclose(mu2, mu2_r, atol=2e-2), "mu mismatch (bf16/grid)"
    assert jnp.allclose(std2, std2_r, atol=1e-6), "std mismatch (bf16/grid)"
    assert jnp.allclose(logp2, logp2_r, atol=2e-1), "logp mismatch (bf16/grid)"

    print("KERNEL_OK")
</pallas_src>

<mosaic_0001>
module attributes {stable_mosaic.version = 11 : i64} {
  func.func @_actor_kernel(%arg0: i32, %arg1: memref<8x16xf32, #tpu.memory_space<vmem>>, %arg2: memref<8x128xf32, #tpu.memory_space<vmem>>, %arg3: memref<16x64xf32, #tpu.memory_space<vmem>>, %arg4: memref<64x64xf32, #tpu.memory_space<vmem>>, %arg5: memref<64x128xf32, #tpu.memory_space<vmem>>, %arg6: memref<4x128xf32, #tpu.memory_space<vmem>>, %arg7: memref<8x128xf32, #tpu.memory_space<vmem>>) attributes {dimension_semantics = [#tpu.dimension_semantics<parallel>], iteration_bounds = array<i64: 1>, scalar_prefetch = 0 : i64, scratch_operands = 0 : i64, tpu.core_type = #tpu.core_type<tc>, window_params = [{transform_indices = @transform_0, window_bounds = array<i64: 8, 16>}, {transform_indices = @transform_1, window_bounds = array<i64: 8, 128>}, {pipeline_mode = #tpu.pipeline_mode<synchronous>, transform_indices = @transform_2, window_bounds = array<i64: 16, 64>}, {pipeline_mode = #tpu.pipeline_mode<synchronous>, transform_indices = @transform_3, window_bounds = array<i64: 64, 64>}, {pipeline_mode = #tpu.pipeline_mode<synchronous>, transform_indices = @transform_4, window_bounds = array<i64: 64, 128>}, {pipeline_mode = #tpu.pipeline_mode<synchronous>, transform_indices = @transform_5, window_bounds = array<i64: 4, 128>}, {transform_indices = @transform_6, window_bounds = array<i64: 8, 128>}]} {
    %c0 = arith.constant 0 : index
    %c0_0 = arith.constant 0 : index
    %0 = vector.load %arg6[%c0, %c0_0] : memref<4x128xf32, #tpu.memory_space<vmem>>, vector<1x64xf32>
    %c1 = arith.constant 1 : index
    %c0_1 = arith.constant 0 : index
    %1 = vector.load %arg6[%c1, %c0_1] : memref<4x128xf32, #tpu.memory_space<vmem>>, vector<1x64xf32>
    %c2 = arith.constant 2 : index
    %c0_2 = arith.constant 0 : index
    %2 = vector.load %arg6[%c2, %c0_2] : memref<4x128xf32, #tpu.memory_space<vmem>>, vector<1x128xf32>
    %c3 = arith.constant 3 : index
    %c0_3 = arith.constant 0 : index
    %3 = vector.load %arg6[%c3, %c0_3] : memref<4x128xf32, #tpu.memory_space<vmem>>, vector<1x128xf32>
    %c0_4 = arith.constant 0 : index
    %c0_5 = arith.constant 0 : index
    %4 = vector.load %arg1[%c0_4, %c0_5] : memref<8x16xf32, #tpu.memory_space<vmem>>, vector<8x16xf32>
    %c0_6 = arith.constant 0 : index
    %c0_7 = arith.constant 0 : index
    %5 = vector.load %arg3[%c0_6, %c0_7] : memref<16x64xf32, #tpu.memory_space<vmem>>, vector<16x64xf32>
    %cst = arith.constant dense<0.000000e+00> : vector<8x64xf32>
    %6 = tpu.matmul %4, %5, %cst {dimension_numbers = #tpu.dot_dimension_numbers<[1], [0], [0], [1], [0, 0, 1, 1], [], []>} : vector<8x16xf32>, vector<16x64xf32>, vector<8x64xf32> -> vector<8x64xf32>
    %7 = vector.broadcast %0 : vector<1x64xf32> to vector<8x64xf32>
    %8 = arith.addf %6, %7 : vector<8x64xf32>
    %cst_8 = arith.constant 0.000000e+00 : f32
    %9 = vector.broadcast %cst_8 : f32 to vector<8x64xf32>
    %10 = arith.maximumf %8, %9 : vector<8x64xf32>
    %c0_9 = arith.constant 0 : index
    %c0_10 = arith.constant 0 : index
    %11 = vector.load %arg4[%c0_9, %c0_10] : memref<64x64xf32, #tpu.memory_space<vmem>>, vector<64x64xf32>
    %cst_11 = arith.constant dense<0.000000e+00> : vector<8x64xf32>
    %12 = tpu.matmul %10, %11, %cst_11 {dimension_numbers = #tpu.dot_dimension_numbers<[1], [0], [0], [1], [0, 0, 1, 1], [], []>} : vector<8x64xf32>, vector<64x64xf32>, vector<8x64xf32> -> vector<8x64xf32>
    %13 = vector.broadcast %1 : vector<1x64xf32> to vector<8x64xf32>
    %14 = arith.addf %12, %13 : vector<8x64xf32>
    %cst_12 = arith.constant 0.000000e+00 : f32
    %15 = vector.broadcast %cst_12 : f32 to vector<8x64xf32>
    %16 = arith.maximumf %14, %15 : vector<8x64xf32>
    %c0_13 = arith.constant 0 : index
    %c0_14 = arith.constant 0 : index
    %17 = vector.load %arg5[%c0_13, %c0_14] : memref<64x128xf32, #tpu.memory_space<vmem>>, vector<64x128xf32>
    %cst_15 = arith.constant dense<0.000000e+00> : vector<8x128xf32>
    %18 = tpu.matmul %16, %17, %cst_15 {dimension_numbers = #tpu.dot_dimension_numbers<[1], [0], [0], [1], [0, 0, 1, 1], [], []>} : vector<8x64xf32>, vector<64x128xf32>, vector<8x128xf32> -> vector<8x128xf32>
    %19 = vector.broadcast %2 : vector<1x128xf32> to vector<8x128xf32>
    %20 = arith.addf %18, %19 : vector<8x128xf32>
    %21 = math.tanh %20 : vector<8x128xf32>
    %cst_16 = arith.constant 2.000000e+00 : f32
    %22 = vector.broadcast %cst_16 : f32 to vector<8x128xf32>
    %23 = arith.mulf %22, %21 : vector<8x128xf32>
    %c0_17 = arith.constant 0 : index
    %c0_18 = arith.constant 0 : index
    %24 = vector.load %arg2[%c0_17, %c0_18] : memref<8x128xf32, #tpu.memory_space<vmem>>, vector<8x128xf32>
    %cst_19 = arith.constant -2.000000e+00 : f32
    %25 = vector.broadcast %cst_19 : f32 to vector<1x128xf32>
    %26 = arith.mulf %25, %3 : vector<1x128xf32>
    %27 = math.exp %26 : vector<1x128xf32>
    %cst_20 = arith.constant 5.000000e-01 : f32
    %28 = vector.broadcast %cst_20 : f32 to vector<1x128xf32>
    %29 = arith.mulf %28, %27 : vector<1x128xf32>
    %30 = arith.subf %24, %23 : vector<8x128xf32>
    %31 = arith.mulf %30, %30 : vector<8x128xf32>
    %cst_21 = arith.constant 0.000000e+00 : f32
    %32 = vector.broadcast %cst_21 : f32 to vector<8x128xf32>
    %33 = arith.subf %32, %31 : vector<8x128xf32>
    %34 = vector.broadcast %29 : vector<1x128xf32> to vector<8x128xf32>
    %35 = arith.mulf %33, %34 : vector<8x128xf32>
    %36 = vector.broadcast %3 : vector<1x128xf32> to vector<8x128xf32>
    %37 = arith.subf %35, %36 : vector<8x128xf32>
    %cst_22 = arith.constant 0.918938517 : f32
    %38 = vector.broadcast %cst_22 : f32 to vector<8x128xf32>
    %39 = arith.subf %37, %38 : vector<8x128xf32>
    %40 = tpu.iota {dimensions = array<i32: 1>} : vector<8x128xi32>
    %c8_i32 = arith.constant 8 : i32
    %41 = vector.broadcast %c8_i32 : i32 to vector<8x128xi32>
    %42 = arith.cmpi slt, %40, %41 : vector<8x128xi32>
    %cst_23 = arith.constant 0.000000e+00 : f32
    %43 = vector.broadcast %cst_23 : f32 to vector<8x128xf32>
    %44 = arith.select %42, %39, %43 : vector<8x128xi1>, vector<8x128xf32>
    %cst_24 = arith.constant dense<0.000000e+00> : vector<8xf32>
    %45 = vector.multi_reduction <add>, %44, %cst_24 [1] : vector<8x128xf32> to vector<8xf32>
    %46 = vector.shape_cast %45 : vector<8xf32> to vector<8x1xf32>
    %c8_i32_25 = arith.constant 8 : i32
    %47 = vector.broadcast %c8_i32_25 : i32 to vector<8x128xi32>
    %48 = arith.cmpi eq, %40, %47 : vector<8x128xi32>
    %cst_26 = arith.constant 0.000000e+00 : f32
    %49 = vector.broadcast %cst_26 : f32 to vector<8x128xf32>
    %50 = arith.select %42, %23, %49 : vector<8x128xi1>, vector<8x128xf32>
    %51 = vector.shape_cast %46 : vector<8x1xf32> to vector<8x1xf32>
    %52 = vector.broadcast %51 : vector<8x1xf32> to vector<8x128xf32>
    %53 = arith.select %48, %52, %50 : vector<8x128xi1>, vector<8x128xf32>
    %c0_27 = arith.constant 0 : index
    %c0_28 = arith.constant 0 : index
    %54 = vector.load %arg7[%c0_27, %c0_28] : memref<8x128xf32, #tpu.memory_space<vmem>>, vector<8x128xf32>
    tpu.vector_store %arg7[%c0_27, %c0_28], %53 {strides = array<i32>} : memref<8x128xf32, #tpu.memory_space<vmem>>, vector<8x128xf32>,
    return
  }
  func.func @transform_0(%arg0: i32) -> (i32, i32) {
    %c0_i32 = arith.constant 0 : i32
    %c0_i32_0 = arith.constant 0 : i32
    return %arg0, %c0_i32 : i32, i32
  }
  func.func @transform_1(%arg0: i32) -> (i32, i32) {
    %c0_i32 = arith.constant 0 : i32
    %c0_i32_0 = arith.constant 0 : i32
    return %arg0, %c0_i32 : i32, i32
  }
  func.func @transform_2(%arg0: i32) -> (i32, i32) {
    %c0_i32 = arith.constant 0 : i32
    %c0_i32_0 = arith.constant 0 : i32
    %c0_i32_1 = arith.constant 0 : i32
    return %c0_i32, %c0_i32_0 : i32, i32
  }
  func.func @transform_3(%arg0: i32) -> (i32, i32) {
    %c0_i32 = arith.constant 0 : i32
    %c0_i32_0 = arith.constant 0 : i32
    %c0_i32_1 = arith.constant 0 : i32
    return %c0_i32, %c0_i32_0 : i32, i32
  }
  func.func @transform_4(%arg0: i32) -> (i32, i32) {
    %c0_i32 = arith.constant 0 : i32
    %c0_i32_0 = arith.constant 0 : i32
    %c0_i32_1 = arith.constant 0 : i32
    return %c0_i32, %c0_i32_0 : i32, i32
  }
  func.func @transform_5(%arg0: i32) -> (i32, i32) {
    %c0_i32 = arith.constant 0 : i32
    %c0_i32_0 = arith.constant 0 : i32
    %c0_i32_1 = arith.constant 0 : i32
    return %c0_i32, %c0_i32_0 : i32, i32
  }
  func.func @transform_6(%arg0: i32) -> (i32, i32) {
    %c0_i32 = arith.constant 0 : i32
    %c0_i32_0 = arith.constant 0 : i32
    return %arg0, %c0_i32 : i32, i32
  }
}

</mosaic_0001>

<bundles_post_ra>
// kernel: tpu_custom_call.1
= control target key start
LH: loop header
LB: loop body
LE: loop exit
PB: predicated region body
PF: predicated region fallthrough
CT: control target
= control target key end

     0   :  { %11 = vsyncpa [#allocation3], 0  ;;  %s719_s0 = inlined_call_operand.hbm [shape: f32[8,16], index: 0, kind: input, shape index: {}]   ;;  %s720_s1 = inlined_call_operand.hbm [shape: f32[8,128], index: 1, kind: input, shape index: {}]   ;;  %s721_s2 = inlined_call_operand.hbm [shape: f32[16,64], index: 2, kind: input, shape index: {}]   ;;  %s722_s3 = inlined_call_operand.hbm [shape: f32[64,64], index: 3, kind: input, shape index: {}]   ;;  %s723_s4 = inlined_call_operand.hbm [shape: f32[64,128], index: 4, kind: input, shape index: {}]   ;;  %s724_s5 = inlined_call_operand.vmem [shape: f32[4,128], index: 5, kind: input, shape index: {}]   ;;  %s725_s6 = inlined_call_operand.hbm [shape: f32[8,128], index: 6, kind: output, shape index: {}]  }
   0x1   :  { %12 = vsyncpa [#allocation6], 0 }
   0x2   :  { %13 = vsyncpa [#allocation9], 0 }
   0x3   :  { %14 = vsyncpa [#allocation4], 0  ;;  %s609_s21 = smov [#allocation5]  }
   0x4   :  { %s31_s22 = sshll.u32 %s609_s21, 4  ;;  %s32_s22 = int_to_ptr.vmem [resolvable:$true] %s31_s22 }
   0x5   :  { %s489_s23 = scalar_lea.vmem %s32_s22, 128  ;;  %p494_p1 = scmp.lt.s32.totalorder %s32_s22, %s32_s22 }
   0x6   :  { %p490_p0 = scmp.ne.s32.totalorder %s32_s22, %s489_s23  ;;  %p495_p2 = scmp.lt.s32.totalorder %s489_s23, %s489_s23 }
   0x8   :  { %p496_p3 = por %p495_p2, %p494_p1 }
   0xa   :  { %p497_p4 = pnand %p496_p3, %p490_p0 }
   0xc   :  { %500 = shalt.err (!%p497_p4)
}
   0xd   :  { %34 = dma.hbm_to_vmem [thread:$0]  %s720_s1, 128, %s32_s22, [#allocation6]  }
   0xe   :  { %s610_s26 = smov [#allocation8]   ;;  %s611_s28 = smov [#allocation2]  }
   0xf   :  { %s52_s27 = sshll.u32 %s610_s26, 4  ;;  %s21_s29 = sshll.u32 %s611_s28, 4  ;;  %s53_s27 = int_to_ptr.vmem [resolvable:$true] %s52_s27  ;;  %s22_s29 = int_to_ptr.vmem [resolvable:$true] %s21_s29 }
  0x10   :  { %s509_s30 = scalar_lea.vmem %s53_s27, 1024  ;;  %p514_p6 = scmp.lt.s32.totalorder %s53_s27, %s53_s27 }
  0x11   :  { %p510_p5 = scmp.ne.s32.totalorder %s53_s27, %s509_s30  ;;  %p515_p7 = scmp.lt.s32.totalorder %s509_s30, %s509_s30 }
  0x13   :  { %p516_p8 = por %p515_p7, %p514_p6 }
  0x15   :  { %p517_p9 = pnand %p516_p8, %p510_p5 }
  0x17   :  { %520 = shalt.err (!%p517_p9)
}
  0x18   :  { %s612_s7 = smov 128   ;;  %s613_s8 = smov 8  }
  0x19   :  { %58 = dma.hbm_to_vmem [thread:$0]  %s722_s3, 1024, %s53_s27, [#allocation9], %s612_s7, %s612_s7, %s613_s8  }
  0x1a   :  { %s529_s1 = scalar_lea.vmem %s22_s29, 128  ;;  %p534_p11 = scmp.lt.s32.totalorder %s22_s29, %s22_s29 }
  0x1b   :  { %p530_p10 = scmp.ne.s32.totalorder %s22_s29, %s529_s1  ;;  %p535_p12 = scmp.lt.s32.totalorder %s529_s1, %s529_s1 }
  0x1d   :  { %p536_p13 = por %p535_p12, %p534_p11 }
  0x1f   :  { %p537_p0 = pnand %p536_p13, %p530_p10 }
  0x21   :  { %540 = shalt.err (!%p537_p0)
}
  0x22   :  { %24 = dma.hbm_to_vmem [thread:$0]  %s719_s0, 128, %s22_s29, [#allocation3]  }
  0x23   :  { %s614_s13 = smov [#allocation7]   ;;  %s615_s15 = smov [#allocation10]  }
  0x24   :  { %s40_s14 = sshll.u32 %s614_s13, 4  ;;  %s64_s16 = sshll.u32 %s615_s15, 4  ;;  %s41_s14 = int_to_ptr.vmem [resolvable:$true] %s40_s14  ;;  %s65_s16 = int_to_ptr.vmem [resolvable:$true] %s64_s16 }
  0x25   :  { %s549_s17 = scalar_lea.vmem %s41_s14, 256  ;;  %p554_p2 = scmp.lt.s32.totalorder %s41_s14, %s41_s14 }
  0x26   :  { %p550_p1 = scmp.ne.s32.totalorder %s41_s14, %s549_s17  ;;  %p555_p3 = scmp.lt.s32.totalorder %s549_s17, %s549_s17 }
  0x28   :  { %p556_p4 = por %p555_p3, %p554_p2 }
  0x2a   :  { %p557_p5 = pnand %p556_p4, %p550_p1 }
  0x2c   :  { %560 = shalt.err (!%p557_p5)
}
  0x2d   :  { %46 = dma.hbm_to_vmem [thread:$0]  %s721_s2, 256, %s41_s14, [#allocation6], %s612_s7, %s612_s7, %s613_s8  }
  0x2e   :  { %s569_s0 = scalar_lea.vmem %s65_s16, 1024  ;;  %p574_p7 = scmp.lt.s32.totalorder %s65_s16, %s65_s16 }
  0x2f   :  { %p570_p6 = scmp.ne.s32.totalorder %s65_s16, %s569_s0  ;;  %p575_p8 = scmp.lt.s32.totalorder %s569_s0, %s569_s0 }
  0x31   :  { %p576_p9 = por %p575_p8, %p574_p7 }
  0x33   :  { %p577_p10 = pnand %p576_p9, %p570_p6 }
  0x35   :  { %580 = shalt.err (!%p577_p10)
}
  0x36   :  { %70 = dma.hbm_to_vmem [thread:$0]  %s723_s4, 1024, %s65_s16, [#allocation9], %s612_s7, %s612_s7, %s613_s8  }
  0x37   :  { %601 = dma.done.wait [#allocation3], 128  }
  0x38   :  { %602 = vsyncadd [#allocation3], 4294967168 }
  0x39   :  { %603 = dma.done.wait [#allocation6], 384  }
  0x3a   :  { %604 = vsyncadd [#allocation6], 4294966912 }
  0x3b   :  { %605 = dma.done.wait [#allocation9], 2048  }
  0x3c   :  { %606 = vsyncadd [#allocation9], 4294965248  ;;  %v616_v0 = vmov 0.0   ;;  %vm617_vm0 = vmmov 0   ;;  %v94_v1 = vld [vmem:[#allocation7 + $0x8] sm:$0xff]  ;;  %v93_v2 = vld [vmem:[#allocation7] sm:$0xff]  ;;  %v356_v37 = vlaneseq }
  0x3d   :  { %422 = vmatprep.subr.mxu0 %v616_v0  ;;  %426 = vmatprep.mubr.msk.f32.mxu0 %vm617_vm0, %v616_v0  ;;  %v92_v3 = vld [vmem:[#allocation2] sm:$0xff]  ;;  %vm99_vm1 = vcmask 130048   ;;  %v181_v4 = vld [vmem:[#allocation8 + $0x38] sm:$0xff]  ;;  %v180_v5 = vld [vmem:[#allocation8 + $0x30] sm:$0xff]  ;;  %vm186_vm2 = vcmask 523264  }
  0x3e   :  { %429 = vmatprep.subr.mxu1 %v616_v0  ;;  %445 = vmatprep.mubr.msk.f32.mxu1 %vm617_vm0, %v616_v0  ;;  %v179_v6 = vld [vmem:[#allocation8 + $0x28] sm:$0xff]  ;;  %v178_v7 = vld [vmem:[#allocation8 + $0x20] sm:$0xff]  ;;  %v177_v8 = vld [vmem:[#allocation8 + $0x18] sm:$0xff]  ;;  %v368_v38 = vand.u32 127, %v356_v37  ;;  %v357_v39 = vshrl.u32 %v356_v37, 7 }
  0x3f   :  { %423 = vmatpush3.msra.mxu0 %v94_v1  ;;  %430 = vmatpush3.msra.mxu1 %v181_v4  ;;  %v176_v9 = vld [vmem:[#allocation8 + $0x10] sm:$0xff]  ;;  %v175_v10 = vld [vmem:[#allocation8 + $0x8] sm:$0xff]  ;;  %v174_v11 = vld [vmem:[#allocation8] sm:$0xff] }
  0x40   :  { %424 = vmatprep.subr.mxu0 %v616_v0  ;;  %431 = vmatprep.subr.mxu1 %v616_v0  ;;  %v268_v12 = vld [vmem:[#allocation10 + $0x38] sm:$0xff]  ;;  %v267_v13 = vld [vmem:[#allocation10 + $0x30] sm:$0xff]  ;;  %v266_v14 = vld [vmem:[#allocation10 + $0x28] sm:$0xff]  ;;  %vm369_vm3 = vcmp.lt.s32.totalorder %v368_v38, 8  ;;  %v358_v45 = vsub.s32 0, %v357_v39  ;;  %vm373_vm4 = vcmp.eq.s32.totalorder %v368_v38, 8 }
  0x41   :  { %425 = vmatpush3.msra.mxu0 %v93_v2  ;;  %432 = vmatpush3.msra.mxu1 %v180_v5  ;;  %v265_v15 = vld [vmem:[#allocation10 + $0x20] sm:$0xff]  ;;  %v264_v16 = vld [vmem:[#allocation10 + $0x18] sm:$0xff]  ;;  %v263_v22 = vld [vmem:[#allocation10 + $0x10] sm:$0xff] }
  0x42   :  { %427 = vmatmul.mubr.msk.f32.vlgmr.msra.gmra.mxu0 %vm99_vm1, %v92_v3  ;;  %433 = vmatprep.subr.mxu1 %v616_v0  ;;  %v394_v17 = vld [vmem:[%s724_s5] ss:$0 sm:$0xff]  ;;  %v262_v23 = vld [vmem:[#allocation10 + $0x8] sm:$0xff]  ;;  %v396_v25 = vld [vmem:[%s724_s5 + $0x1] ss:$0 sm:$0xff] }
  0x43   :  { %448 = vmatprep.subr.mxu0 %v616_v0  ;;  %434 = vmatpush3.msra.mxu1 %v179_v6  ;;  %v261_v24 = vld [vmem:[#allocation10] sm:$0xff]  ;;  %v348_v42 = vld [vmem:[#allocation5] sm:$0xff] }
  0x44   :  { %464 = vmatprep.mubr.msk.f32.mxu0 %vm617_vm0, %v616_v0  ;;  %435 = vmatprep.subr.mxu1 %v616_v0  ;;  %v91_v30 = vld [vmem:[%s724_s5 + $0x3] sm:$0x1]  ;;  %v398_v33 = vld [vmem:[%s724_s5 + $0x2] ss:$0 sm:$0xff]  ;;  %s618_s5 = smov [#allocation11]  }
  0x45   :  { %436 = vmatpush3.msra.mxu1 %v178_v7  ;;  %449 = vmatpush3.msra.mxu0 %v268_v12  ;;  %v349_v31 = vmul.f32 -2.0, %v91_v30  ;;  %v364_v51 = vrot.slane %v91_v30, %v358_v45  ;;  %s383_s27 = sshll.u32 %s618_s5, 4  ;;  %s384_s27 = int_to_ptr.vmem [resolvable:$true] %s383_s27 }
  0x46   :  { %437 = vmatprep.subr.mxu1 %v616_v0  ;;  %450 = vmatprep.subr.mxu0 %v616_v0  ;;  %s581_s28 = scalar_lea.vmem %s384_s27, 128  ;;  %p586_p12 = scmp.lt.s32.totalorder %s384_s27, %s384_s27 }
  0x47   :  { %438 = vmatpush3.msra.mxu1 %v177_v8  ;;  %451 = vmatpush3.msra.mxu0 %v267_v13  ;;  %v350_v32 = vmul.f32 1.442695, %v349_v31  ;;  %p582_p11 = scmp.ne.s32.totalorder %s384_s27, %s581_s28  ;;  %p587_p13 = scmp.lt.s32.totalorder %s581_s28, %s581_s28 }
  0x48   :  { %439 = vmatprep.subr.mxu1 %v616_v0  ;;  %452 = vmatprep.subr.mxu0 %v616_v0 }
  0x49   :  { %440 = vmatpush3.msra.mxu1 %v176_v9  ;;  %453 = vmatpush3.msra.mxu0 %v266_v14  ;;  %477 = vpow2.f32 %v350_v32  ;;  %p588_p0 = por %p587_p13, %p586_p12 }
  0x4a   :  { %441 = vmatprep.subr.mxu1 %v616_v0  ;;  %454 = vmatprep.subr.mxu0 %v616_v0 }
  0x4b   :  { %442 = vmatpush3.msra.mxu1 %v175_v10  ;;  %455 = vmatpush3.msra.mxu0 %v265_v15  ;;  %p589_p1 = pnand %p588_p0, %p582_p11 }
  0x4c   :  { %443 = vmatprep.subr.mxu1 %v616_v0  ;;  %456 = vmatprep.subr.mxu0 %v616_v0 }
  0x4d   :  { %444 = vmatpush3.msra.mxu1 %v174_v11  ;;  %457 = vmatpush3.msra.mxu0 %v264_v16 }
  0x4e   :  { %458 = vmatprep.subr.mxu0 %v616_v0 }
  0x4f   :  { %459 = vmatpush3.msra.mxu0 %v263_v22 }
  0x50   :  { %460 = vmatprep.subr.mxu0 %v616_v0 }
  0x51   :  { %461 = vmatpush3.msra.mxu0 %v262_v23 }
  0x52   :  { %462 = vmatprep.subr.mxu0 %v616_v0 }
  0x53   :  { %463 = vmatpush3.msra.mxu0 %v261_v24 }
  0x56   :  { %v478_v40 = vpop.eup %477 }
  0x57   :  { %v352_v44 = vmul.f32 0.5, %v478_v40 }
  0x59   :  { %v359_v49 = vrot.slane %v352_v44, %v358_v45 }
 0x102   :  { %v169_v18 = vpop.f32.mrf.mxu0 }
 0x103   :  { %v170_v19 = vadd.f32 %v394_v17, %v169_v18 }
 0x104   :  { %v428_v20 = vpop.f32.mrf.mxu0 }
 0x105   :  { %v173_v21 = vmax.f32 %v170_v19, 0.0 }
 0x107   :  { %446 = vmatmul.mubr.msk.f32.vlgmr.msra.gmra.mxu1 %vm186_vm2, %v173_v21 }
 0x1c7   :  { %v256_v26 = vpop.f32.mrf.mxu1 }
 0x1c8   :  { %v257_v27 = vadd.f32 %v396_v25, %v256_v26 }
 0x1c9   :  { %v447_v28 = vpop.f32.mrf.mxu1 }
 0x1ca   :  { %v260_v29 = vmax.f32 %v257_v27, 0.0 }
 0x1cc   :  { %465 = vmatmul.mubr.msk.f32.vlgmr.msra.gmra.mxu0 %vm186_vm2, %v260_v29 }
 0x28c   :  { %v342_v34 = vpop.f32.mrf.mxu0 }
 0x28d   :  { %v343_v35 = vadd.f32 %v398_v33, %v342_v34 }
 0x28e   :  { %v466_v36 = vpop.f32.mrf.mxu0 }
 0x28f   :  { %479 = vtanh.f32 %v343_v35 }
 0x29c   :  { %v480_v41 = vpop.eup %479 }
 0x29d   :  { %v347_v43 = vmul.f32 2.0, %v480_v41 }
 0x29f   :  { %v353_v46 = vsub.f32 %v348_v42, %v347_v43  ;;  %v374_v47 = vsel %vm369_vm3, %v347_v43, 0.0 }
 0x2a1   :  { %v354_v48 = vmul.f32 %v353_v46, %v353_v46 }
 0x2a3   :  { %v355_v50 = vsub.f32 0.0, %v354_v48 }
 0x2a5   :  { %v360_v52 = vmul.f32 %v359_v49, %v355_v50 }
 0x2a7   :  { %v365_v53 = vsub.f32 %v360_v52, %v364_v51 }
 0x2a9   :  { %v400_v54 = vadd.f32 -0.9189385, %v365_v53 }
 0x2ab   :  { %v370_v55 = vsel %vm369_vm3, %v400_v54, 0.0 }
 0x2ac   :  { %371 = vadd.xlane.f32.xlu0 %v370_v55 }
 0x335   :  { %v372_v56 = vpop.xlane.xlu0 %371 }
 0x336   :  { %v375_v57 = vsel %vm373_vm4, %v372_v56, %v374_v47 }
 0x337   :  { %376 = vst [vmem:[#allocation11] sm:$0xff] %v375_v57 }
 0x338   :  { %592 = shalt.err (!%p589_p1)
}
 0x339   :  { %386 = dma.vmem_to_hbm [thread:$0]  %s384_s27, 128, %s725_s6, [#allocation4]  }
 0x33a   :  { %607 = dma.done.wait [#allocation4], 128  }
 0x33b   :  { %608 = vsyncadd [#allocation4], 4294967168 }
 0x33c   :  { %390 = vsyncpa [#allocation3], 1 }
 0x33d   :  { %391 = vsyncpa [#allocation6], 1 }
 0x33e   :  { %392 = vsyncpa [#allocation9], 1 }
 0x33f   :  { %393 = vsyncpa [#allocation4], 1 }

</bundles_post_ra>
